<compile_context>
chip_gen: v6e
topology: v6e:2x2x1
jax: 0.10.0
libtpu: 0.0.40
codegen_flags: <defaults>
</compile_context>

<pallas_src>
import functools

import jax
import jax.numpy as jnp
from jax.experimental import pallas as pl
from jax.experimental.pallas import tpu as pltpu

HIDDEN = 256
OUT_PAD = 128  # lane-dense padded width for the 10-wide final layer


def _mlp_kernel(x_ref, w1_ref, b1_ref, w2_ref, b2_ref, w3_ref, b3_ref, o_ref):
    x = x_ref[...]            # (bm, 4)  f32
    w1 = w1_ref[...]          # (4, 256) f32

    # ---- Layer 1: Linear(4 -> 256) + ReLU, on the VPU (K=4 is wasted on the MXU) ----
    h1 = b1_ref[...] + x[:, 0:1] * w1[0:1, :]
    for k in range(1, 4):     # tiny static unroll: 3 more broadcast FMAs
        h1 = h1 + x[:, k:k + 1] * w1[k:k + 1, :]
    h1 = jnp.maximum(h1, 0.0)                       # (bm, 256) f32

    # ---- Layer 2: Linear(256 -> 256) + ReLU, bf16 MXU with f32 accumulation ----
    h2 = jnp.dot(h1.astype(jnp.bfloat16), w2_ref[...],
                 preferred_element_type=jnp.float32)
    h2 = jnp.maximum(h2 + b2_ref[...], 0.0)         # (bm, 256) f32

    # ---- Layer 3: Linear(256 -> 128-padded), bf16 MXU, lane-dense store ----
    out = jnp.dot(h2.astype(jnp.bfloat16), w3_ref[...],
                  preferred_element_type=jnp.float32)
    o_ref[...] = (out + b3_ref[...]).astype(o_ref.dtype)   # (bm, 128) unmasked store


@functools.partial(jax.jit, static_argnames=())
def generator_forward(x, params):
    """Pallas TPU forward pass of the 3-layer MLP generator. x: (batch, 4) f32."""
    w1, b1, w2, b2, w3, b3 = params
    batch, in_f = x.shape
    out_f = w3.shape[1]

    # bf16 weights for the MXU layers (halves the dominant w2 DMA bytes).
    w2_bf = w2.astype(jnp.bfloat16)
    # Zero-pad the final layer to a lane-dense 128-wide output.
    w3_pad = jnp.zeros((HIDDEN, OUT_PAD), jnp.bfloat16).at[:, :out_f].set(
        w3.astype(jnp.bfloat16))
    b3_pad = jnp.zeros((1, OUT_PAD), jnp.float32).at[:, :out_f].set(b3)

    # Batch tiling: up to 128 rows per grid step, padded to a multiple of the tile.
    bm = min(128, ((batch + 7) // 8) * 8)
    padded = pl.cdiv(batch, bm) * bm
    if padded != batch:
        x_in = jnp.zeros((padded, in_f), x.dtype).at[:batch].set(x)
    else:
        x_in = x

    const = lambda shape: pl.BlockSpec(shape, lambda i: (0, 0))  # weights stay resident

    out = pl.pallas_call(
        _mlp_kernel,
        out_shape=jax.ShapeDtypeStruct((padded, OUT_PAD), jnp.float32),
        grid=(padded // bm,),
        in_specs=[
            pl.BlockSpec((bm, in_f), lambda i: (i, 0)),   # x: tiled over batch
            const(w1.shape), const(b1.shape),
            const(w2_bf.shape), const(b2.shape),
            const(w3_pad.shape), const(b3_pad.shape),
        ],
        out_specs=pl.BlockSpec((bm, OUT_PAD), lambda i: (i, 0)),
        compiler_params=pltpu.CompilerParams(
            dimension_semantics=("parallel",)),
    )(x_in, w1, b1, w2_bf, b2, w3_pad, b3_pad)

    return out[:batch, :out_f]


def init_params(key):
    """Deterministic PyTorch-style init: U(-1/sqrt(fan_in), 1/sqrt(fan_in)).

    Weights are stored as (in, out) so the kernel computes y = x @ W + b,
    equivalent to PyTorch's x @ W.T + b.
    """
    dims = [(4, HIDDEN), (HIDDEN, HIDDEN), (HIDDEN, 10)]
    params = []
    for fan_in, fan_out in dims:
        key, kw, kb = jax.random.split(key, 3)
        bound = 1.0 / (fan_in ** 0.5)
        w = jax.random.uniform(kw, (fan_in, fan_out), jnp.float32, -bound, bound)
        b = jax.random.uniform(kb, (1, fan_out), jnp.float32, -bound, bound)
        params += [w, b]
    return tuple(params)


def reference_forward(x, params):
    """Pure-JAX reference using the same bf16 weight quantization as the kernel."""
    w1, b1, w2, b2, w3, b3 = params
    h1 = jnp.maximum(x @ w1 + b1, 0.0)
    h2 = jnp.dot(h1.astype(jnp.bfloat16), w2.astype(jnp.bfloat16),
                 preferred_element_type=jnp.float32) + b2
    h2 = jnp.maximum(h2, 0.0)
    return jnp.dot(h2.astype(jnp.bfloat16), w3.astype(jnp.bfloat16),
                   preferred_element_type=jnp.float32) + b3


if __name__ == "__main__":
    key = jax.random.PRNGKey(0)
    k_params, k_x = jax.random.split(key)

    params = init_params(k_params)
    batch = 8
    x = jax.random.normal(k_x, (batch, 4), jnp.float32)

    out = generator_forward(x, params)
    out = jax.block_until_ready(out)

    ref = reference_forward(x, params)
    assert out.shape == (batch, 10), out.shape
    assert jnp.allclose(out, ref, atol=1e-2, rtol=1e-2), \
        "mismatch vs pure-JAX (bf16-weight) reference"

    print("KERNEL_OK")
</pallas_src>

<mosaic_0001>
module attributes {stable_mosaic.version = 11 : i64} {
  func.func @_mlp_kernel(%arg0: i32, %arg1: memref<8x4xf32, #tpu.memory_space<vmem>>, %arg2: memref<4x256xf32, #tpu.memory_space<vmem>>, %arg3: memref<1x256xf32, #tpu.memory_space<vmem>>, %arg4: memref<256x256xbf16, #tpu.memory_space<vmem>>, %arg5: memref<1x256xf32, #tpu.memory_space<vmem>>, %arg6: memref<256x128xbf16, #tpu.memory_space<vmem>>, %arg7: memref<1x128xf32, #tpu.memory_space<vmem>>, %arg8: memref<8x128xf32, #tpu.memory_space<vmem>>) attributes {dimension_semantics = [#tpu.dimension_semantics<parallel>], iteration_bounds = array<i64: 1>, scalar_prefetch = 0 : i64, scratch_operands = 0 : i64, tpu.core_type = #tpu.core_type<tc>, window_params = [{transform_indices = @transform_0, window_bounds = array<i64: 8, 4>}, {pipeline_mode = #tpu.pipeline_mode<synchronous>, transform_indices = @transform_1, window_bounds = array<i64: 4, 256>}, {pipeline_mode = #tpu.pipeline_mode<synchronous>, transform_indices = @transform_2, window_bounds = array<i64: 1, 256>}, {pipeline_mode = #tpu.pipeline_mode<synchronous>, transform_indices = @transform_3, window_bounds = array<i64: 256, 256>}, {pipeline_mode = #tpu.pipeline_mode<synchronous>, transform_indices = @transform_4, window_bounds = array<i64: 1, 256>}, {pipeline_mode = #tpu.pipeline_mode<synchronous>, transform_indices = @transform_5, window_bounds = array<i64: 256, 128>}, {pipeline_mode = #tpu.pipeline_mode<synchronous>, transform_indices = @transform_6, window_bounds = array<i64: 1, 128>}, {transform_indices = @transform_7, window_bounds = array<i64: 8, 128>}]} {
    %c0 = arith.constant 0 : index
    %c0_0 = arith.constant 0 : index
    %0 = vector.load %arg1[%c0, %c0_0] : memref<8x4xf32, #tpu.memory_space<vmem>>, vector<8x4xf32>
    %c0_1 = arith.constant 0 : index
    %c0_2 = arith.constant 0 : index
    %1 = vector.load %arg2[%c0_1, %c0_2] : memref<4x256xf32, #tpu.memory_space<vmem>>, vector<4x256xf32>
    %c0_3 = arith.constant 0 : index
    %c0_4 = arith.constant 0 : index
    %2 = vector.load %arg3[%c0_3, %c0_4] : memref<1x256xf32, #tpu.memory_space<vmem>>, vector<1x256xf32>
    %3 = vector.extract_strided_slice %0 {offsets = [0, 0], sizes = [8, 1], strides = [1, 1]} : vector<8x4xf32> to vector<8x1xf32>
    %4 = vector.extract_strided_slice %1 {offsets = [0, 0], sizes = [1, 256], strides = [1, 1]} : vector<4x256xf32> to vector<1x256xf32>
    %5 = vector.broadcast %3 : vector<8x1xf32> to vector<8x256xf32>
    %6 = vector.broadcast %4 : vector<1x256xf32> to vector<8x256xf32>
    %7 = arith.mulf %5, %6 : vector<8x256xf32>
    %8 = vector.broadcast %2 : vector<1x256xf32> to vector<8x256xf32>
    %9 = arith.addf %8, %7 : vector<8x256xf32>
    %10 = vector.extract_strided_slice %0 {offsets = [0, 1], sizes = [8, 1], strides = [1, 1]} : vector<8x4xf32> to vector<8x1xf32>
    %11 = vector.extract_strided_slice %1 {offsets = [1, 0], sizes = [1, 256], strides = [1, 1]} : vector<4x256xf32> to vector<1x256xf32>
    %12 = vector.broadcast %10 : vector<8x1xf32> to vector<8x256xf32>
    %13 = vector.broadcast %11 : vector<1x256xf32> to vector<8x256xf32>
    %14 = arith.mulf %12, %13 : vector<8x256xf32>
    %15 = arith.addf %9, %14 : vector<8x256xf32>
    %16 = vector.extract_strided_slice %0 {offsets = [0, 2], sizes = [8, 1], strides = [1, 1]} : vector<8x4xf32> to vector<8x1xf32>
    %17 = vector.extract_strided_slice %1 {offsets = [2, 0], sizes = [1, 256], strides = [1, 1]} : vector<4x256xf32> to vector<1x256xf32>
    %18 = vector.broadcast %16 : vector<8x1xf32> to vector<8x256xf32>
    %19 = vector.broadcast %17 : vector<1x256xf32> to vector<8x256xf32>
    %20 = arith.mulf %18, %19 : vector<8x256xf32>
    %21 = arith.addf %15, %20 : vector<8x256xf32>
    %22 = vector.extract_strided_slice %0 {offsets = [0, 3], sizes = [8, 1], strides = [1, 1]} : vector<8x4xf32> to vector<8x1xf32>
    %23 = vector.extract_strided_slice %1 {offsets = [3, 0], sizes = [1, 256], strides = [1, 1]} : vector<4x256xf32> to vector<1x256xf32>
    %24 = vector.broadcast %22 : vector<8x1xf32> to vector<8x256xf32>
    %25 = vector.broadcast %23 : vector<1x256xf32> to vector<8x256xf32>
    %26 = arith.mulf %24, %25 : vector<8x256xf32>
    %27 = arith.addf %21, %26 : vector<8x256xf32>
    %cst = arith.constant 0.000000e+00 : f32
    %28 = vector.broadcast %cst : f32 to vector<8x256xf32>
    %29 = arith.maximumf %27, %28 : vector<8x256xf32>
    %30 = arith.truncf %29 : vector<8x256xf32> to vector<8x256xbf16>
    %c0_5 = arith.constant 0 : index
    %c0_6 = arith.constant 0 : index
    %31 = vector.load %arg4[%c0_5, %c0_6] : memref<256x256xbf16, #tpu.memory_space<vmem>>, vector<256x256xbf16>
    %cst_7 = arith.constant dense<0.000000e+00> : vector<8x256xf32>
    %32 = tpu.matmul %30, %31, %cst_7 {dimension_numbers = #tpu.dot_dimension_numbers<[1], [0], [0], [1], [0, 0, 1, 1], [], []>} : vector<8x256xbf16>, vector<256x256xbf16>, vector<8x256xf32> -> vector<8x256xf32>
    %c0_8 = arith.constant 0 : index
    %c0_9 = arith.constant 0 : index
    %33 = vector.load %arg5[%c0_8, %c0_9] : memref<1x256xf32, #tpu.memory_space<vmem>>, vector<1x256xf32>
    %34 = vector.broadcast %33 : vector<1x256xf32> to vector<8x256xf32>
    %35 = arith.addf %32, %34 : vector<8x256xf32>
    %cst_10 = arith.constant 0.000000e+00 : f32
    %36 = vector.broadcast %cst_10 : f32 to vector<8x256xf32>
    %37 = arith.maximumf %35, %36 : vector<8x256xf32>
    %38 = arith.truncf %37 : vector<8x256xf32> to vector<8x256xbf16>
    %c0_11 = arith.constant 0 : index
    %c0_12 = arith.constant 0 : index
    %39 = vector.load %arg6[%c0_11, %c0_12] : memref<256x128xbf16, #tpu.memory_space<vmem>>, vector<256x128xbf16>
    %cst_13 = arith.constant dense<0.000000e+00> : vector<8x128xf32>
    %40 = tpu.matmul %38, %39, %cst_13 {dimension_numbers = #tpu.dot_dimension_numbers<[1], [0], [0], [1], [0, 0, 1, 1], [], []>} : vector<8x256xbf16>, vector<256x128xbf16>, vector<8x128xf32> -> vector<8x128xf32>
    %c0_14 = arith.constant 0 : index
    %c0_15 = arith.constant 0 : index
    %41 = vector.load %arg7[%c0_14, %c0_15] : memref<1x128xf32, #tpu.memory_space<vmem>>, vector<1x128xf32>
    %42 = vector.broadcast %41 : vector<1x128xf32> to vector<8x128xf32>
    %43 = arith.addf %40, %42 : vector<8x128xf32>
    %c0_16 = arith.constant 0 : index
    %c0_17 = arith.constant 0 : index
    %44 = vector.load %arg8[%c0_16, %c0_17] : memref<8x128xf32, #tpu.memory_space<vmem>>, vector<8x128xf32>
    tpu.vector_store %arg8[%c0_16, %c0_17], %43 {strides = array<i32>} : memref<8x128xf32, #tpu.memory_space<vmem>>, vector<8x128xf32>,
    return
  }
  func.func @transform_0(%arg0: i32) -> (i32, i32) {
    %c0_i32 = arith.constant 0 : i32
    %c0_i32_0 = arith.constant 0 : i32
    return %arg0, %c0_i32 : i32, i32
  }
  func.func @transform_1(%arg0: i32) -> (i32, i32) {
    %c0_i32 = arith.constant 0 : i32
    %c0_i32_0 = arith.constant 0 : i32
    %c0_i32_1 = arith.constant 0 : i32
    return %c0_i32, %c0_i32_0 : i32, i32
  }
  func.func @transform_2(%arg0: i32) -> (i32, i32) {
    %c0_i32 = arith.constant 0 : i32
    %c0_i32_0 = arith.constant 0 : i32
    %c0_i32_1 = arith.constant 0 : i32
    return %c0_i32, %c0_i32_0 : i32, i32
  }
  func.func @transform_3(%arg0: i32) -> (i32, i32) {
    %c0_i32 = arith.constant 0 : i32
    %c0_i32_0 = arith.constant 0 : i32
    %c0_i32_1 = arith.constant 0 : i32
    return %c0_i32, %c0_i32_0 : i32, i32
  }
  func.func @transform_4(%arg0: i32) -> (i32, i32) {
    %c0_i32 = arith.constant 0 : i32
    %c0_i32_0 = arith.constant 0 : i32
    %c0_i32_1 = arith.constant 0 : i32
    return %c0_i32, %c0_i32_0 : i32, i32
  }
  func.func @transform_5(%arg0: i32) -> (i32, i32) {
    %c0_i32 = arith.constant 0 : i32
    %c0_i32_0 = arith.constant 0 : i32
    %c0_i32_1 = arith.constant 0 : i32
    return %c0_i32, %c0_i32_0 : i32, i32
  }
  func.func @transform_6(%arg0: i32) -> (i32, i32) {
    %c0_i32 = arith.constant 0 : i32
    %c0_i32_0 = arith.constant 0 : i32
    %c0_i32_1 = arith.constant 0 : i32
    return %c0_i32, %c0_i32_0 : i32, i32
  }
  func.func @transform_7(%arg0: i32) -> (i32, i32) {
    %c0_i32 = arith.constant 0 : i32
    %c0_i32_0 = arith.constant 0 : i32
    return %arg0, %c0_i32 : i32, i32
  }
}

</mosaic_0001>

<bundles_post_ra>
// kernel: generator_forward.1
= control target key start
LH: loop header
LB: loop body
LE: loop exit
PB: predicated region body
PF: predicated region fallthrough
CT: control target
= control target key end

     0   :  { %v758_v1 = vmov 0   ;;  %v759_v2 = vmov 2   ;;  %v760_v8 = vmov 1   ;;  %v761_v9 = vmov 3   ;;  %s979_s0 = inlined_call_operand.vmem [shape: f32[8,4], index: 0, kind: input, shape index: {}]   ;;  %s980_s1 = inlined_call_operand.vmem [shape: f32[4,256], index: 1, kind: input, shape index: {}]   ;;  %s981_s2 = inlined_call_operand.vmem [shape: f32[1,256], index: 2, kind: input, shape index: {}]   ;;  %s982_s3 = inlined_call_operand.vmem [shape: bf16[256,256], index: 3, kind: input, shape index: {}]   ;;  %s983_s4 = inlined_call_operand.vmem [shape: f32[1,256], index: 4, kind: input, shape index: {}]   ;;  %s984_s5 = inlined_call_operand.vmem [shape: bf16[256,128], index: 5, kind: input, shape index: {}]   ;;  %s985_s6 = inlined_call_operand.vmem [shape: f32[1,128], index: 6, kind: input, shape index: {}]   ;;  %s986_s7 = inlined_call_operand.hbm [shape: f32[8,128], index: 7, kind: output, shape index: {}]  }
   0x1   :  { %v28_v0 = vld [vmem:[%s979_s0] sm:$0xff]  ;;  %667 = vset.pattern.permute.xlu0 %v758_v1  ;;  %669 = vset.pattern.permute.xlu1 %v759_v2  ;;  %v672_v3 = vld [vmem:[%s982_s3 + $0x74] ss:$8 sps:$4 sm:$0xff]   ;;  %v674_v4 = vld [vmem:[%s982_s3 + $0x70] ss:$8 sps:$4 sm:$0xff]  }
   0x2   :  { %33 = vperm.xlu0 %667, %v28_v0   ;;  %97 = vperm.xlu1 %669, %v28_v0   ;;  %v675_v5 = vld [vmem:[%s982_s3 + $0x64] ss:$8 sps:$4 sm:$0xff]   ;;  %v677_v6 = vld [vmem:[%s982_s3 + $0x60] ss:$8 sps:$4 sm:$0xff]   ;;  %v678_v7 = vld [vmem:[%s982_s3 + $0x54] ss:$8 sps:$4 sm:$0xff]  }
   0x3   :  { %356 = vmatprep.subr.bf16.mxu0 %v672_v3  ;;  %v680_v10 = vld [vmem:[%s982_s3 + $0x50] ss:$8 sps:$4 sm:$0xff]   ;;  %v681_v11 = vld [vmem:[%s982_s3 + $0x44] ss:$8 sps:$4 sm:$0xff]   ;;  %v683_v12 = vld [vmem:[%s982_s3 + $0x40] ss:$8 sps:$4 sm:$0xff]  }
   0x4   :  { %357 = vmatpush1.bf16.msra.mxu0 %v674_v4  ;;  %v684_v13 = vld [vmem:[%s982_s3 + $0x34] ss:$8 sps:$4 sm:$0xff]   ;;  %v686_v14 = vld [vmem:[%s982_s3 + $0x30] ss:$8 sps:$4 sm:$0xff]   ;;  %v687_v15 = vld [vmem:[%s982_s3 + $0x24] ss:$8 sps:$4 sm:$0xff]  }
   0x5   :  { %358 = vmatprep.subr.bf16.mxu0 %v675_v5  ;;  %v689_v16 = vld [vmem:[%s982_s3 + $0x20] ss:$8 sps:$4 sm:$0xff]   ;;  %v690_v17 = vld [vmem:[%s982_s3 + $0x14] ss:$8 sps:$4 sm:$0xff]   ;;  %v692_v18 = vld [vmem:[%s982_s3 + $0x10] ss:$8 sps:$4 sm:$0xff]  }
   0x6   :  { %668 = vset.pattern.permute.xlu0 %v760_v8  ;;  %670 = vset.pattern.permute.xlu1 %v761_v9  ;;  %v693_v19 = vld [vmem:[%s982_s3 + $0x4] ss:$8 sps:$4 sm:$0xff]   ;;  %v720_v20 = vld [vmem:[%s984_s5 + $0x78] sm:$0xff]   ;;  %v722_v22 = vld [vmem:[%s984_s5 + $0x70] sm:$0xff]  }
   0x7   :  { %71 = vperm.xlu0 %668, %v28_v0   ;;  %123 = vperm.xlu1 %670, %v28_v0   ;;  %v721_v21 = vld [vmem:[%s984_s5 + $0x38] sm:$0xff]   ;;  %v723_v23 = vld [vmem:[%s984_s5 + $0x30] sm:$0xff]   ;;  %v724_v24 = vld [vmem:[%s984_s5 + $0x68] sm:$0xff]  }
   0x8   :  { %359 = vmatpush1.bf16.msra.mxu0 %v677_v6  ;;  %640 = vmatprep.subr.bf16.mxu1 %v720_v20  ;;  %v695_v25 = vld [vmem:[%s982_s3] ss:$8 sps:$4 sm:$0xff]   ;;  %v696_v26 = vld [vmem:[%s982_s3 + $0xf4] ss:$8 sps:$4 sm:$0xff]   ;;  %v698_v29 = vld [vmem:[%s982_s3 + $0xf0] ss:$8 sps:$4 sm:$0xff]  }
   0x9   :  { %360 = vmatprep.subr.bf16.mxu0 %v678_v7  ;;  %641 = vmatpush3.bf16.msra.mxu1 %v721_v21  ;;  %v725_v27 = vld [vmem:[%s984_s5 + $0x28] sm:$0xff]   ;;  %v726_v28 = vld [vmem:[%s984_s5 + $0x60] sm:$0xff]   ;;  %v728_v33 = vld [vmem:[%s984_s5 + $0x58] sm:$0xff]  }
   0xa   :  { %642 = vmatprep.subr.bf16.mxu1 %v722_v22  ;;  %v699_v30 = vld [vmem:[%s982_s3 + $0xe4] ss:$8 sps:$4 sm:$0xff]   ;;  %v701_v31 = vld [vmem:[%s982_s3 + $0xe0] ss:$8 sps:$4 sm:$0xff]   ;;  %v702_v34 = vld [vmem:[%s982_s3 + $0xd4] ss:$8 sps:$4 sm:$0xff]  }
   0xb   :  { %671 = vset.pattern.permute.xlu0 %v761_v9  ;;  %v727_v32 = vld [vmem:[%s984_s5 + $0x20] sm:$0xff]  }
   0xc   :  { %361 = vmatpush1.bf16.msra.mxu0 %v680_v10 }
   0xd   :  { %362 = vmatprep.subr.bf16.mxu0 %v681_v11  ;;  %643 = vmatpush3.bf16.msra.mxu1 %v723_v23 }
   0xe   :  { %644 = vmatprep.subr.bf16.mxu1 %v724_v24 }
  0x10   :  { %363 = vmatpush1.bf16.msra.mxu0 %v683_v12 }
  0x11   :  { %364 = vmatprep.subr.bf16.mxu0 %v684_v13  ;;  %645 = vmatpush3.bf16.msra.mxu1 %v725_v27 }
  0x12   :  { %646 = vmatprep.subr.bf16.mxu1 %v726_v28 }
  0x14   :  { %365 = vmatpush1.bf16.msra.mxu0 %v686_v14 }
  0x15   :  { %366 = vmatprep.subr.bf16.mxu0 %v687_v15 }
  0x18   :  { %367 = vmatpush1.bf16.msra.mxu0 %v689_v16 }
  0x19   :  { %368 = vmatprep.subr.bf16.mxu0 %v690_v17 }
  0x1c   :  { %369 = vmatpush1.bf16.msra.mxu0 %v692_v18 }
  0x1d   :  { %370 = vmatprep.subr.bf16.mxu0 %v693_v19 }
  0x20   :  { %371 = vmatpush1.bf16.msra.mxu0 %v695_v25 }
  0x21   :  { %372 = vmatprep.subr.bf16.mxu0 %v696_v26 }
  0x24   :  { %373 = vmatpush2.bf16.msra.mxu0 %v698_v29 }
  0x25   :  { %374 = vmatprep.subr.bf16.mxu0 %v699_v30 }
  0x26   :  { %12 = vsyncpa [#allocation3], 0  ;;  %647 = vmatpush3.bf16.msra.mxu1 %v727_v32  ;;  %v729_v35 = vld [vmem:[%s984_s5 + $0x18] sm:$0xff]   ;;  %v730_v36 = vld [vmem:[%s984_s5 + $0x50] sm:$0xff]   ;;  %v37_v49 = vlaneseq  ;;  %s762_s29 = smov [#allocation2]  }
  0x27   :  { %648 = vmatprep.subr.bf16.mxu1 %v728_v33  ;;  %v704_v37 = vld [vmem:[%s982_s3 + $0xd0] ss:$8 sps:$4 sm:$0xff]   ;;  %v705_v38 = vld [vmem:[%s982_s3 + $0xc4] ss:$8 sps:$4 sm:$0xff]   ;;  %v707_v40 = vld [vmem:[%s982_s3 + $0xc0] ss:$8 sps:$4 sm:$0xff]  }
  0x28   :  { %375 = vmatpush2.bf16.msra.mxu0 %v701_v31  ;;  %v731_v39 = vld [vmem:[%s984_s5 + $0x10] sm:$0xff]   ;;  %v711_v43 = vld [vmem:[%s982_s3 + $0xa4] ss:$8 sps:$4 sm:$0xff]   ;;  %v713_v44 = vld [vmem:[%s982_s3 + $0xa0] ss:$8 sps:$4 sm:$0xff]   ;;  %v38_v50 = vshrl.u32 %v37_v49, 7 }
  0x29   :  { %376 = vmatprep.subr.bf16.mxu0 %v702_v34  ;;  %v708_v41 = vld [vmem:[%s982_s3 + $0xb4] ss:$8 sps:$4 sm:$0xff]   ;;  %v710_v42 = vld [vmem:[%s982_s3 + $0xb0] ss:$8 sps:$4 sm:$0xff]   ;;  %v717_v47 = vld [vmem:[%s982_s3 + $0x84] ss:$8 sps:$4 sm:$0xff]  }
  0x2a   :  { %649 = vmatpush3.bf16.msra.mxu1 %v729_v35  ;;  %v714_v45 = vld [vmem:[%s982_s3 + $0x94] ss:$8 sps:$4 sm:$0xff]   ;;  %v716_v46 = vld [vmem:[%s982_s3 + $0x90] ss:$8 sps:$4 sm:$0xff]   ;;  %v719_v48 = vld [vmem:[%s982_s3 + $0x80] ss:$8 sps:$4 sm:$0xff]  }
  0x2b   :  { %650 = vmatprep.subr.bf16.mxu1 %v730_v36  ;;  %v938_v51 = vsub.s32 0, %v38_v50  ;;  %v43_v52 = vsub.s32 4, %v38_v50  ;;  %v29_v53 = vld [vmem:[%s980_s1] sm:$0xff]  ;;  %v944_v56 = vsub.s32 1, %v38_v50  ;;  %v80_v57 = vsub.s32 5, %v38_v50  ;;  %s583_s30 = sshll.u32 %s762_s29, 4  ;;  %s584_s30 = int_to_ptr.vmem [resolvable:$true] %s583_s30 }
  0x2c   :  { %377 = vmatpush2.bf16.msra.mxu0 %v704_v37  ;;  %v102_v58 = vsub.s32 2, %v38_v50  ;;  %v106_v59 = vsub.s32 6, %v38_v50  ;;  %v128_v60 = vsub.s32 3, %v38_v50  ;;  %v132_v61 = vsub.s32 7, %v38_v50  ;;  %v30_v62 = vld [vmem:[%s981_s2] sm:$0x3]  ;;  %p741_p1 = scmp.lt.s32.totalorder %s584_s30, %s584_s30 }
  0x2d   :  { %378 = vmatprep.subr.bf16.mxu0 %v705_v38  ;;  %v40_v54 = vrot.slane %v29_v53, %v938_v51  ;;  %v44_v55 = vrot.slane %v29_v53, %v43_v52  ;;  %v77_v1 = vrot.slane %v29_v53, %v944_v56  ;;  %v81_v2 = vrot.slane %v29_v53, %v80_v57  ;;  %s736_s8 = scalar_lea.vmem %s584_s30, 128 }
  0x2e   :  { %651 = vmatpush3.bf16.msra.mxu1 %v731_v39  ;;  %v103_v3 = vrot.slane %v29_v53, %v102_v58  ;;  %v107_v4 = vrot.slane %v29_v53, %v106_v59  ;;  %v129_v7 = vrot.slane %v29_v53, %v128_v60  ;;  %v133_v8 = vrot.slane %v29_v53, %v132_v61  ;;  %v732_v39 = vld [vmem:[%s984_s5 + $0x48] sm:$0xff]   ;;  %p737_p0 = scmp.ne.s32.totalorder %s584_s30, %s736_s8  ;;  %p742_p2 = scmp.lt.s32.totalorder %s736_s8, %s736_s8 }
  0x2f   :  { %v50_v63 = vrot.slane %v40_v54, %v938_v51  ;;  %v54_v0 = vrot.slane %v44_v55, %v938_v51  ;;  %v61_v9 = vrot.slane %v30_v62, %v938_v51  ;;  %v65_v10 = vrot.slane %v30_v62, %v944_v56  ;;  %652 = vmatprep.subr.bf16.mxu1 %v732_v39 }
  0x30   :  { %379 = vmatpush2.bf16.msra.mxu0 %v707_v40  ;;  %v87_v13 = vrot.slane %v77_v1, %v944_v56  ;;  %v91_v14 = vrot.slane %v81_v2, %v944_v56  ;;  %v113_v15 = vrot.slane %v103_v3, %v102_v58  ;;  %v117_v16 = vrot.slane %v107_v4, %v102_v58  ;;  %v733_v40 = vld [vmem:[%s984_s5 + $0x8] sm:$0xff]   ;;  %p743_p3 = por %p742_p2, %p741_p1 }
  0x31   :  { %380 = vmatprep.subr.bf16.mxu0 %v708_v41  ;;  %v139_v17 = vrot.slane %v129_v7, %v128_v60  ;;  %v143_v18 = vrot.slane %v133_v8, %v128_v60  ;;  %v734_v41 = vld [vmem:[%s984_s5 + $0x40] sm:$0xff]  }
  0x32   :  { %653 = vmatpush3.bf16.msra.mxu1 %v733_v40  ;;  %p744_p4 = pnand %p743_p3, %p737_p0 }
  0x33   :  { %654 = vmatprep.subr.bf16.mxu1 %v734_v41 }
  0x34   :  { %381 = vmatpush2.bf16.msra.mxu0 %v710_v42  ;;  %v735_v42 = vld [vmem:[%s984_s5] sm:$0xff]  }
  0x35   :  { %382 = vmatprep.subr.bf16.mxu0 %v711_v43  ;;  %v184_v43 = vld [vmem:[%s983_s4] sm:$0x3] }
  0x36   :  { %655 = vmatpush3.bf16.msra.mxu1 %v735_v42 }
  0x38   :  { %383 = vmatpush2.bf16.msra.mxu0 %v713_v44  ;;  %v189_v44 = vrot.slane %v184_v43, %v938_v51  ;;  %v623_v51 = vld [vmem:[%s985_s6] ss:$0 sm:$0xff] }
  0x39   :  { %384 = vmatprep.subr.bf16.mxu0 %v714_v45  ;;  %v193_v45 = vrot.slane %v184_v43, %v944_v56 }
  0x3c   :  { %385 = vmatpush2.bf16.msra.mxu0 %v716_v46 }
  0x3d   :  { %386 = vmatprep.subr.bf16.mxu0 %v717_v47 }
  0x40   :  { %387 = vmatpush2.bf16.msra.mxu0 %v719_v48 }
  0x7d   :  { %v34_v5 = vpop.permute.xlu0 %33  ;;  %v98_v6 = vpop.permute.xlu1 %97 }
  0x7e   :  { %v55_v11 = vmul.f32 %v50_v63, %v34_v5  ;;  %v56_v12 = vmul.f32 %v54_v0, %v34_v5  ;;  %v118_v25 = vmul.f32 %v113_v15, %v98_v6  ;;  %v119_v26 = vmul.f32 %v117_v16, %v98_v6 }
  0x80   :  { %v68_v21 = vadd.f32 %v61_v9, %v55_v11  ;;  %v69_v22 = vadd.f32 %v65_v10, %v56_v12 }
  0x82   :  { %v72_v19 = vpop.permute.xlu0 %71  ;;  %v124_v20 = vpop.permute.xlu1 %123 }
  0x83   :  { %v92_v23 = vmul.f32 %v87_v13, %v72_v19  ;;  %v93_v24 = vmul.f32 %v91_v14, %v72_v19  ;;  %v144_v29 = vmul.f32 %v139_v17, %v124_v20  ;;  %v145_v30 = vmul.f32 %v143_v18, %v124_v20 }
  0x85   :  { %v94_v27 = vadd.f32 %v92_v23, %v68_v21  ;;  %v95_v28 = vadd.f32 %v93_v24, %v69_v22 }
  0x87   :  { %v120_v31 = vadd.f32 %v118_v25, %v94_v27  ;;  %v121_v32 = vadd.f32 %v119_v26, %v95_v28 }
  0x89   :  { %v146_v33 = vadd.f32 %v144_v29, %v120_v31  ;;  %v147_v34 = vadd.f32 %v145_v30, %v121_v32 }
  0x8b   :  { %v148_v35 = vmax.f32 %v146_v33, 0.0  ;;  %v149_v36 = vmax.f32 %v147_v34, 0.0 }
  0x8d   :  { %v150_v37 = vpack.c.bf16 %v148_v35, %v148_v35  ;;  %v151_v38 = vpack.c.bf16 %v149_v36, %v149_v36 }
  0x8f   :  { %388 = vmatprep.mubr.bf16.mxu0 %v151_v38 }
  0x90   :  { %389 = vmatmul.mubr.bf16.vlgmr.msra.gmra.mxu0 %v150_v37 }
 0x150   :  { %v390_v46 = vpop.f32.mrf.mxu0 }
 0x151   :  { %v391_v47 = vadd.f32 %v390_v46, %v189_v44 }
 0x152   :  { %v392_v48 = vpop.f32.mrf.mxu0 }
 0x153   :  { %v393_v49 = vadd.f32 %v392_v48, %v193_v45  ;;  %v397_v50 = vmax.f32 %v391_v47, 0.0 }
 0x154   :  { %v394_v52 = vpop.f32.mrf.mxu0 }
 0x155   :  { %v398_v53 = vmax.f32 %v393_v49, 0.0  ;;  %v399_v57 = vpack.c.bf16 %v397_v50, %v397_v50 }
 0x156   :  { %v395_v54 = vpop.f32.mrf.mxu0 }
 0x157   :  { %v400_v55 = vpack.c.bf16 %v398_v53, %v398_v53 }
 0x159   :  { %568 = vmatprep.mubr.bf16.mxu1 %v400_v55 }
 0x15a   :  { %569 = vmatmul.mubr.bf16.vlgmr.msra.gmra.mxu1 %v399_v57 }
 0x21a   :  { %v656_v58 = vpop.f32.mrf.mxu1 }
 0x21c   :  { %v657_v59 = vpop.f32.mrf.mxu1 }
 0x21d   :  { %v658_v56 = vadd.f32 %v657_v59, %v656_v58 }
 0x21e   :  { %v659_v60 = vpop.f32.mrf.mxu1 }
 0x21f   :  { %v571_v61 = vadd.f32 %v658_v56, %v623_v51 }
 0x220   :  { %v660_v62 = vpop.f32.mrf.mxu1 }
 0x221   :  { %576 = vst [vmem:[#allocation2] sm:$0xff] %v571_v61 }
 0x222   :  { %747 = shalt.err (!%p744_p4)
}
 0x223   :  { %586 = dma.vmem_to_hbm [thread:$0]  %s584_s30, 128, %s986_s7, [#allocation3]  }
 0x224   :  { %756 = dma.done.wait [#allocation3], 128  }
 0x225   :  { %757 = vsyncadd [#allocation3], 4294967168 }
 0x226   :  { %590 = vsyncpa [#allocation3], 1 }

</bundles_post_ra>
